<compile_context>
chip_gen: v6e
topology: v6e:2x2x1
jax: 0.10.0
libtpu: 0.0.40
codegen_flags: <defaults>
</compile_context>

<pallas_src>
import jax
import jax.numpy as jnp
from jax.experimental import pallas as pl
from jax.experimental.pallas import tpu as pltpu

IN_DIM = 256
HID_DIM = 64
OUT_DIM = 8

# Keep 3 inputs x 2 pipeline buffers of (tm, 256) tiles under this budget so
# the default scoped-VMEM limit is respected on every generation (16 MiB on
# v5e, 32 MiB on v6e/v7x).
_INPUT_VMEM_BUDGET_BYTES = 12 * 1024 * 1024


def _round_up(x: int, m: int) -> int:
    return ((x + m - 1) // m) * m


def _similarity_kernel(x1_ref, x2_ref, x3_ref,
                       w1_ref, b1_ref, w2_ref, b2_ref,
                       o1_ref, o2_ref, o3_ref):
    w1 = w1_ref[...]          # (256, 64) bf16, resident across the grid
    b1 = b1_ref[...]          # (1, 64)   f32
    w2 = w2_ref[...]          # (64, 8)   bf16
    b2 = b2_ref[...]          # (1, 8)    f32

    def mlp(x_ref):
        x = x_ref[...].astype(jnp.bfloat16)        # no-op if already bf16
        h = jnp.dot(x, w1, preferred_element_type=jnp.float32) + b1
        h = jnp.maximum(h, 0.0).astype(jnp.bfloat16)   # ReLU, bf16 for 2nd MXU pass
        return jnp.dot(h, w2, preferred_element_type=jnp.float32) + b2

    o1_ref[...] = mlp(x1_ref).astype(o1_ref.dtype)
    o2_ref[...] = mlp(x2_ref).astype(o2_ref.dtype)
    o3_ref[...] = mlp(x3_ref).astype(o3_ref.dtype)


def similarity_forward(i1, i2, i3, w1, b1, w2, b2, *, block_rows: int = 4096):
    """Applies the shared 2-layer MLP to the three inputs in one Pallas call.

    i1, i2, i3 : (B, 256), ideally bfloat16 (f32 also accepted; it is cast to
                 bf16 inside the kernel so only the HBM-read width changes).
    w1 : (256, 64), b1 : (64,), w2 : (64, 8), b2 : (8,)
    block_rows : cap on the batch-tile size (actual tile is also bounded by a
                 VMEM budget and by a >=2-grid-step clamp for v7x megacore).
    returns (o1, o2, o3), each (B, 8) float32.
    """
    B = i1.shape[0]
    itemsize = max(jnp.dtype(x.dtype).itemsize for x in (i1, i2, i3))

    # Tile size: respect the VMEM budget, keep >=2 grid steps when B allows
    # (so the "parallel" axis can split across v7x's two TensorCores), and
    # round to a multiple of 16 (bf16 sublane packing).
    budget_rows = _INPUT_VMEM_BUDGET_BYTES // (3 * 2 * IN_DIM * itemsize)
    tm = min(block_rows, budget_rows)
    tm = min(tm, _round_up(pl.cdiv(B, 2), 16))
    tm = max(16, _round_up(tm, 16))

    grid = (pl.cdiv(B, tm),)   # partial last block handled by Pallas masking

    # Resident (grid-invariant) parameters: weights in bf16, biases in f32.
    w1_b = w1.astype(jnp.bfloat16)
    w2_b = w2.astype(jnp.bfloat16)
    b1_2d = b1.reshape(1, HID_DIM).astype(jnp.float32)
    b2_2d = b2.reshape(1, OUT_DIM).astype(jnp.float32)

    x_spec = pl.BlockSpec((tm, IN_DIM), lambda i: (i, 0))
    w1_spec = pl.BlockSpec((IN_DIM, HID_DIM), lambda i: (0, 0))
    b1_spec = pl.BlockSpec((1, HID_DIM), lambda i: (0, 0))
    w2_spec = pl.BlockSpec((HID_DIM, OUT_DIM), lambda i: (0, 0))
    b2_spec = pl.BlockSpec((1, OUT_DIM), lambda i: (0, 0))
    out_spec = pl.BlockSpec((tm, OUT_DIM), lambda i: (i, 0))

    out_sds = jax.ShapeDtypeStruct((B, OUT_DIM), jnp.float32)

    flops = 2 * 3 * B * (IN_DIM * HID_DIM + HID_DIM * OUT_DIM)
    act_bytes = sum(int(x.size) * jnp.dtype(x.dtype).itemsize
                    for x in (i1, i2, i3))
    out_bytes = 3 * B * OUT_DIM * 4
    w_bytes = (IN_DIM * HID_DIM + HID_DIM * OUT_DIM) * 2 \
        + (HID_DIM + OUT_DIM) * 4
    bytes_accessed = act_bytes + out_bytes + w_bytes

    o1, o2, o3 = pl.pallas_call(
        _similarity_kernel,
        out_shape=(out_sds, out_sds, out_sds),
        grid_spec=pltpu.PrefetchScalarGridSpec(
            num_scalar_prefetch=0,
            grid=grid,
            in_specs=[x_spec, x_spec, x_spec,
                      w1_spec, b1_spec, w2_spec, b2_spec],
            out_specs=(out_spec, out_spec, out_spec),
        ),
        compiler_params=pltpu.CompilerParams(
            dimension_semantics=("parallel",),
        ),
        cost_estimate=pl.CostEstimate(
            flops=flops, transcendentals=0, bytes_accessed=bytes_accessed),
    )(i1, i2, i3, w1_b, b1_2d, w2_b, b2_2d)

    return o1, o2, o3


def _reference(i1, i2, i3, w1, b1, w2, b2):
    """Pure-JAX reference mirroring the kernel's bf16/f32 numerics."""
    w1_b = w1.astype(jnp.bfloat16)
    w2_b = w2.astype(jnp.bfloat16)

    def mlp(x):
        xb = x.astype(jnp.bfloat16)
        h = jnp.dot(xb, w1_b, preferred_element_type=jnp.float32) + b1
        h = jnp.maximum(h, 0.0).astype(jnp.bfloat16)
        return jnp.dot(h, w2_b, preferred_element_type=jnp.float32) + b2

    return mlp(i1), mlp(i2), mlp(i3)


if __name__ == "__main__":
    key = jax.random.PRNGKey(0)
    k_i1, k_i2, k_i3, k_w1, k_b1, k_w2, k_b2 = jax.random.split(key, 7)

    # Deterministic parameter init (stored as (in, out), i.e. PyTorch weight.T).
    w1 = jax.random.normal(k_w1, (IN_DIM, HID_DIM), dtype=jnp.float32) * 0.05
    b1 = jax.random.normal(k_b1, (HID_DIM,), dtype=jnp.float32) * 0.05
    w2 = jax.random.normal(k_w2, (HID_DIM, OUT_DIM), dtype=jnp.float32) * 0.05
    b2 = jax.random.normal(k_b2, (OUT_DIM,), dtype=jnp.float32) * 0.05

    # --- Small-batch check (single grid step), bf16 activation streaming ---
    B = 16
    i1 = jax.random.normal(k_i1, (B, IN_DIM), jnp.float32).astype(jnp.bfloat16)
    i2 = jax.random.normal(k_i2, (B, IN_DIM), jnp.float32).astype(jnp.bfloat16)
    i3 = jax.random.normal(k_i3, (B, IN_DIM), jnp.float32).astype(jnp.bfloat16)

    o1, o2, o3 = similarity_forward(i1, i2, i3, w1, b1, w2, b2)
    jax.block_until_ready((o1, o2, o3))

    r1, r2, r3 = _reference(i1, i2, i3, w1, b1, w2, b2)
    assert o1.shape == (B, OUT_DIM) and o1.dtype == jnp.float32
    assert jnp.allclose(o1, r1, atol=5e-3, rtol=5e-3)
    assert jnp.allclose(o2, r2, atol=5e-3, rtol=5e-3)
    assert jnp.allclose(o3, r3, atol=5e-3, rtol=5e-3)

    # --- Tiled + ragged-batch check (grid > 1, B % tile != 0, no jnp.pad) ---
    B2 = 300
    j1 = jax.random.normal(k_i1, (B2, IN_DIM), jnp.float32).astype(jnp.bfloat16)
    j2 = jax.random.normal(k_i2, (B2, IN_DIM), jnp.float32).astype(jnp.bfloat16)
    j3 = jax.random.normal(k_i3, (B2, IN_DIM), jnp.float32).astype(jnp.bfloat16)

    p1, p2, p3 = similarity_forward(j1, j2, j3, w1, b1, w2, b2,
                                    block_rows=128)
    jax.block_until_ready((p1, p2, p3))

    q1, q2, q3 = _reference(j1, j2, j3, w1, b1, w2, b2)
    assert p1.shape == (B2, OUT_DIM)
    assert jnp.allclose(p1, q1, atol=5e-3, rtol=5e-3)
    assert jnp.allclose(p2, q2, atol=5e-3, rtol=5e-3)
    assert jnp.allclose(p3, q3, atol=5e-3, rtol=5e-3)

    print("KERNEL_OK")
</pallas_src>

<mosaic_0001>
module attributes {stable_mosaic.version = 11 : i64} {
  func.func @_similarity_kernel(%arg0: i32, %arg1: memref<16x256xbf16, #tpu.memory_space<vmem>>, %arg2: memref<16x256xbf16, #tpu.memory_space<vmem>>, %arg3: memref<16x256xbf16, #tpu.memory_space<vmem>>, %arg4: memref<256x64xbf16, #tpu.memory_space<vmem>>, %arg5: memref<1x64xf32, #tpu.memory_space<vmem>>, %arg6: memref<64x8xbf16, #tpu.memory_space<vmem>>, %arg7: memref<1x8xf32, #tpu.memory_space<vmem>>, %arg8: memref<16x8xf32, #tpu.memory_space<vmem>>, %arg9: memref<16x8xf32, #tpu.memory_space<vmem>>, %arg10: memref<16x8xf32, #tpu.memory_space<vmem>>) attributes {dimension_semantics = [#tpu.dimension_semantics<parallel>], iteration_bounds = array<i64: 1>, scalar_prefetch = 0 : i64, scratch_operands = 0 : i64, tpu.core_type = #tpu.core_type<tc>, window_params = [{transform_indices = @transform_0, window_bounds = array<i64: 16, 256>}, {transform_indices = @transform_1, window_bounds = array<i64: 16, 256>}, {transform_indices = @transform_2, window_bounds = array<i64: 16, 256>}, {pipeline_mode = #tpu.pipeline_mode<synchronous>, transform_indices = @transform_3, window_bounds = array<i64: 256, 64>}, {pipeline_mode = #tpu.pipeline_mode<synchronous>, transform_indices = @transform_4, window_bounds = array<i64: 1, 64>}, {pipeline_mode = #tpu.pipeline_mode<synchronous>, transform_indices = @transform_5, window_bounds = array<i64: 64, 8>}, {pipeline_mode = #tpu.pipeline_mode<synchronous>, transform_indices = @transform_6, window_bounds = array<i64: 1, 8>}, {transform_indices = @transform_7, window_bounds = array<i64: 16, 8>}, {transform_indices = @transform_8, window_bounds = array<i64: 16, 8>}, {transform_indices = @transform_9, window_bounds = array<i64: 16, 8>}]} {
    %c0 = arith.constant 0 : index
    %c0_0 = arith.constant 0 : index
    %0 = vector.load %arg4[%c0, %c0_0] : memref<256x64xbf16, #tpu.memory_space<vmem>>, vector<256x64xbf16>
    %c0_1 = arith.constant 0 : index
    %c0_2 = arith.constant 0 : index
    %1 = vector.load %arg5[%c0_1, %c0_2] : memref<1x64xf32, #tpu.memory_space<vmem>>, vector<1x64xf32>
    %c0_3 = arith.constant 0 : index
    %c0_4 = arith.constant 0 : index
    %2 = vector.load %arg6[%c0_3, %c0_4] : memref<64x8xbf16, #tpu.memory_space<vmem>>, vector<64x8xbf16>
    %c0_5 = arith.constant 0 : index
    %c0_6 = arith.constant 0 : index
    %3 = vector.load %arg7[%c0_5, %c0_6] : memref<1x8xf32, #tpu.memory_space<vmem>>, vector<1x8xf32>
    %c0_7 = arith.constant 0 : index
    %c0_8 = arith.constant 0 : index
    %4 = vector.load %arg1[%c0_7, %c0_8] : memref<16x256xbf16, #tpu.memory_space<vmem>>, vector<16x256xbf16>
    %cst = arith.constant dense<0.000000e+00> : vector<16x64xf32>
    %5 = tpu.matmul %4, %0, %cst {dimension_numbers = #tpu.dot_dimension_numbers<[1], [0], [0], [1], [0, 0, 1, 1], [], []>} : vector<16x256xbf16>, vector<256x64xbf16>, vector<16x64xf32> -> vector<16x64xf32>
    %6 = vector.broadcast %1 : vector<1x64xf32> to vector<16x64xf32>
    %7 = arith.addf %5, %6 : vector<16x64xf32>
    %cst_9 = arith.constant 0.000000e+00 : f32
    %8 = vector.broadcast %cst_9 : f32 to vector<16x64xf32>
    %9 = arith.maximumf %7, %8 : vector<16x64xf32>
    %10 = arith.truncf %9 : vector<16x64xf32> to vector<16x64xbf16>
    %cst_10 = arith.constant dense<0.000000e+00> : vector<16x8xf32>
    %11 = tpu.matmul %10, %2, %cst_10 {dimension_numbers = #tpu.dot_dimension_numbers<[1], [0], [0], [1], [0, 0, 1, 1], [], []>} : vector<16x64xbf16>, vector<64x8xbf16>, vector<16x8xf32> -> vector<16x8xf32>
    %12 = vector.broadcast %3 : vector<1x8xf32> to vector<16x8xf32>
    %13 = arith.addf %11, %12 : vector<16x8xf32>
    %c0_11 = arith.constant 0 : index
    %c0_12 = arith.constant 0 : index
    %14 = vector.load %arg8[%c0_11, %c0_12] : memref<16x8xf32, #tpu.memory_space<vmem>>, vector<16x8xf32>
    tpu.vector_store %arg8[%c0_11, %c0_12], %13 {strides = array<i32>} : memref<16x8xf32, #tpu.memory_space<vmem>>, vector<16x8xf32>,
    %c0_13 = arith.constant 0 : index
    %c0_14 = arith.constant 0 : index
    %15 = vector.load %arg2[%c0_13, %c0_14] : memref<16x256xbf16, #tpu.memory_space<vmem>>, vector<16x256xbf16>
    %cst_15 = arith.constant dense<0.000000e+00> : vector<16x64xf32>
    %16 = tpu.matmul %15, %0, %cst_15 {dimension_numbers = #tpu.dot_dimension_numbers<[1], [0], [0], [1], [0, 0, 1, 1], [], []>} : vector<16x256xbf16>, vector<256x64xbf16>, vector<16x64xf32> -> vector<16x64xf32>
    %17 = vector.broadcast %1 : vector<1x64xf32> to vector<16x64xf32>
    %18 = arith.addf %16, %17 : vector<16x64xf32>
    %cst_16 = arith.constant 0.000000e+00 : f32
    %19 = vector.broadcast %cst_16 : f32 to vector<16x64xf32>
    %20 = arith.maximumf %18, %19 : vector<16x64xf32>
    %21 = arith.truncf %20 : vector<16x64xf32> to vector<16x64xbf16>
    %cst_17 = arith.constant dense<0.000000e+00> : vector<16x8xf32>
    %22 = tpu.matmul %21, %2, %cst_17 {dimension_numbers = #tpu.dot_dimension_numbers<[1], [0], [0], [1], [0, 0, 1, 1], [], []>} : vector<16x64xbf16>, vector<64x8xbf16>, vector<16x8xf32> -> vector<16x8xf32>
    %23 = vector.broadcast %3 : vector<1x8xf32> to vector<16x8xf32>
    %24 = arith.addf %22, %23 : vector<16x8xf32>
    %c0_18 = arith.constant 0 : index
    %c0_19 = arith.constant 0 : index
    %25 = vector.load %arg9[%c0_18, %c0_19] : memref<16x8xf32, #tpu.memory_space<vmem>>, vector<16x8xf32>
    tpu.vector_store %arg9[%c0_18, %c0_19], %24 {strides = array<i32>} : memref<16x8xf32, #tpu.memory_space<vmem>>, vector<16x8xf32>,
    %c0_20 = arith.constant 0 : index
    %c0_21 = arith.constant 0 : index
    %26 = vector.load %arg3[%c0_20, %c0_21] : memref<16x256xbf16, #tpu.memory_space<vmem>>, vector<16x256xbf16>
    %cst_22 = arith.constant dense<0.000000e+00> : vector<16x64xf32>
    %27 = tpu.matmul %26, %0, %cst_22 {dimension_numbers = #tpu.dot_dimension_numbers<[1], [0], [0], [1], [0, 0, 1, 1], [], []>} : vector<16x256xbf16>, vector<256x64xbf16>, vector<16x64xf32> -> vector<16x64xf32>
    %28 = vector.broadcast %1 : vector<1x64xf32> to vector<16x64xf32>
    %29 = arith.addf %27, %28 : vector<16x64xf32>
    %cst_23 = arith.constant 0.000000e+00 : f32
    %30 = vector.broadcast %cst_23 : f32 to vector<16x64xf32>
    %31 = arith.maximumf %29, %30 : vector<16x64xf32>
    %32 = arith.truncf %31 : vector<16x64xf32> to vector<16x64xbf16>
    %cst_24 = arith.constant dense<0.000000e+00> : vector<16x8xf32>
    %33 = tpu.matmul %32, %2, %cst_24 {dimension_numbers = #tpu.dot_dimension_numbers<[1], [0], [0], [1], [0, 0, 1, 1], [], []>} : vector<16x64xbf16>, vector<64x8xbf16>, vector<16x8xf32> -> vector<16x8xf32>
    %34 = vector.broadcast %3 : vector<1x8xf32> to vector<16x8xf32>
    %35 = arith.addf %33, %34 : vector<16x8xf32>
    %c0_25 = arith.constant 0 : index
    %c0_26 = arith.constant 0 : index
    %36 = vector.load %arg10[%c0_25, %c0_26] : memref<16x8xf32, #tpu.memory_space<vmem>>, vector<16x8xf32>
    tpu.vector_store %arg10[%c0_25, %c0_26], %35 {strides = array<i32>} : memref<16x8xf32, #tpu.memory_space<vmem>>, vector<16x8xf32>,
    return
  }
  func.func @transform_0(%arg0: i32) -> (i32, i32) {
    %c0_i32 = arith.constant 0 : i32
    %c0_i32_0 = arith.constant 0 : i32
    return %arg0, %c0_i32 : i32, i32
  }
  func.func @transform_1(%arg0: i32) -> (i32, i32) {
    %c0_i32 = arith.constant 0 : i32
    %c0_i32_0 = arith.constant 0 : i32
    return %arg0, %c0_i32 : i32, i32
  }
  func.func @transform_2(%arg0: i32) -> (i32, i32) {
    %c0_i32 = arith.constant 0 : i32
    %c0_i32_0 = arith.constant 0 : i32
    return %arg0, %c0_i32 : i32, i32
  }
  func.func @transform_3(%arg0: i32) -> (i32, i32) {
    %c0_i32 = arith.constant 0 : i32
    %c0_i32_0 = arith.constant 0 : i32
    %c0_i32_1 = arith.constant 0 : i32
    return %c0_i32, %c0_i32_0 : i32, i32
  }
  func.func @transform_4(%arg0: i32) -> (i32, i32) {
    %c0_i32 = arith.constant 0 : i32
    %c0_i32_0 = arith.constant 0 : i32
    %c0_i32_1 = arith.constant 0 : i32
    return %c0_i32, %c0_i32_0 : i32, i32
  }
  func.func @transform_5(%arg0: i32) -> (i32, i32) {
    %c0_i32 = arith.constant 0 : i32
    %c0_i32_0 = arith.constant 0 : i32
    %c0_i32_1 = arith.constant 0 : i32
    return %c0_i32, %c0_i32_0 : i32, i32
  }
  func.func @transform_6(%arg0: i32) -> (i32, i32) {
    %c0_i32 = arith.constant 0 : i32
    %c0_i32_0 = arith.constant 0 : i32
    %c0_i32_1 = arith.constant 0 : i32
    return %c0_i32, %c0_i32_0 : i32, i32
  }
  func.func @transform_7(%arg0: i32) -> (i32, i32) {
    %c0_i32 = arith.constant 0 : i32
    %c0_i32_0 = arith.constant 0 : i32
    return %arg0, %c0_i32 : i32, i32
  }
  func.func @transform_8(%arg0: i32) -> (i32, i32) {
    %c0_i32 = arith.constant 0 : i32
    %c0_i32_0 = arith.constant 0 : i32
    return %arg0, %c0_i32 : i32, i32
  }
  func.func @transform_9(%arg0: i32) -> (i32, i32) {
    %c0_i32 = arith.constant 0 : i32
    %c0_i32_0 = arith.constant 0 : i32
    return %arg0, %c0_i32 : i32, i32
  }
}

</mosaic_0001>

<bundles_post_ra>
// kernel: tpu_custom_call.1
= control target key start
LH: loop header
LB: loop body
LE: loop exit
PB: predicated region body
PF: predicated region fallthrough
CT: control target
= control target key end

     0   :  { %v703_v1 = vmov 0.0   ;;  %vm704_vm0 = vmmov 0   ;;  %vm260_vm1 = vcmask 523264   ;;  %vm305_vm2 = vcmask 64512   ;;  %s980_s3 = inlined_call_operand.vmem [shape: bf16[256,64], index: 3, kind: input, shape index: {}]   ;;  %s981_s0 = inlined_call_operand.vmem [shape: bf16[16,256], index: 0, kind: input, shape index: {}]   ;;  %s982_s5 = inlined_call_operand.vmem [shape: bf16[64,8], index: 5, kind: input, shape index: {}]   ;;  %s983_s1 = inlined_call_operand.vmem [shape: bf16[16,256], index: 1, kind: input, shape index: {}]   ;;  %s984_s4 = inlined_call_operand.vmem [shape: f32[1,64], index: 4, kind: input, shape index: {}]   ;;  %s985_s2 = inlined_call_operand.vmem [shape: bf16[16,256], index: 2, kind: input, shape index: {}]   ;;  %s986_s6 = inlined_call_operand.vmem [shape: f32[1,8], index: 6, kind: input, shape index: {}]   ;;  %s987_s7 = inlined_call_operand.vmem [shape: f32[16,8], index: 7, kind: output, shape index: {0}]   ;;  %s988_s8 = inlined_call_operand.vmem [shape: f32[16,8], index: 8, kind: output, shape index: {1}]   ;;  %s989_s9 = inlined_call_operand.vmem [shape: f32[16,8], index: 9, kind: output, shape index: {2}]  }
   0x1   :  { %v674_v0 = vld [vmem:[%s980_s3 + $0x78] sm:$0xff]   ;;  %636 = vmatprep.subr.bf16.mxu1 %v703_v1  ;;  %v767_v3 = vld [vmem:[%s980_s3 + $0x70] sm:$0xff]   ;;  %v779_v5 = vld [vmem:[%s980_s3 + $0x68] sm:$0xff]   ;;  %644 = vmatprep.mubr.msk.bf16.mxu1 %vm704_vm0, %v703_v1 }
   0x2   :  { %v762_v2 = vld [vmem:[%s980_s3 + $0x38] sm:$0xff]   ;;  %555 = vmatprep.subr.bf16.mxu0 %v674_v0  ;;  %v773_v4 = vld [vmem:[%s980_s3 + $0x30] sm:$0xff]   ;;  %v785_v6 = vld [vmem:[%s980_s3 + $0x28] sm:$0xff]  }
   0x3   :  { %556 = vmatpush3.bf16.msra.mxu0 %v762_v2  ;;  %v791_v7 = vld [vmem:[%s980_s3 + $0x60] sm:$0xff]   ;;  %v803_v9 = vld [vmem:[%s980_s3 + $0x58] sm:$0xff]   ;;  %v815_v11 = vld [vmem:[%s980_s3 + $0x50] sm:$0xff]  }
   0x4   :  { %557 = vmatprep.subr.bf16.mxu0 %v767_v3  ;;  %v797_v8 = vld [vmem:[%s980_s3 + $0x20] sm:$0xff]   ;;  %v809_v10 = vld [vmem:[%s980_s3 + $0x18] sm:$0xff]   ;;  %v820_v12 = vld [vmem:[%s980_s3 + $0x10] sm:$0xff]  }
   0x5   :  { %v692_v13 = vld [vmem:[%s981_s0 + $0x4] ss:$8 sps:$4 sm:$0xff]   ;;  %v828_v14 = vld [vmem:[%s982_s5 + $0x18] sm:$0xff]   ;;  %v690_v19 = vld [vmem:[%s981_s0] ss:$8 sps:$4 sm:$0xff]  }
   0x6   :  { %218 = vmatprep.mubr.bf16.mxu0 %v692_v13  ;;  %v835_v15 = vld [vmem:[%s980_s3 + $0x48] sm:$0xff]   ;;  %637 = vmatpush3.bf16.msra.mxu1 %v828_v14  ;;  %v849_v17 = vld [vmem:[%s980_s3 + $0x40] sm:$0xff]   ;;  %v694_v20 = vld [vmem:[%s982_s5 + $0x10] sm:$0xff]  }
   0x7   :  { %558 = vmatpush3.bf16.msra.mxu0 %v773_v4  ;;  %638 = vmatprep.subr.bf16.mxu1 %v703_v1  ;;  %v843_v16 = vld [vmem:[%s980_s3 + $0x8] sm:$0xff]   ;;  %v855_v18 = vld [vmem:[%s980_s3] sm:$0xff]  }
   0x8   :  { %559 = vmatprep.subr.bf16.mxu0 %v779_v5  ;;  %v695_v21 = vld [vmem:[%s982_s5 + $0x8] sm:$0xff]   ;;  %v696_v22 = vld [vmem:[%s982_s5] sm:$0xff]  }
   0x9   :  { %v885_v26 = vld [vmem:[%s984_s4] ss:$0 sm:$0xff]  ;;  %v699_v34 = vld [vmem:[%s983_s1 + $0x4] ss:$8 sps:$4 sm:$0xff]  }
   0xa   :  { %639 = vmatpush3.bf16.msra.mxu1 %v694_v20  ;;  %v697_v36 = vld [vmem:[%s983_s1] ss:$8 sps:$4 sm:$0xff]   ;;  %v702_v54 = vld [vmem:[%s985_s2 + $0x4] ss:$8 sps:$4 sm:$0xff]  }
   0xb   :  { %560 = vmatpush3.bf16.msra.mxu0 %v785_v6  ;;  %640 = vmatprep.subr.bf16.mxu1 %v703_v1  ;;  %v921_v37 = vld [vmem:[%s986_s6] ss:$0 sm:$0xff] }
   0xc   :  { %561 = vmatprep.subr.bf16.mxu0 %v791_v7  ;;  %v700_v56 = vld [vmem:[%s985_s2] ss:$8 sps:$4 sm:$0xff]  }
   0xe   :  { %641 = vmatpush3.bf16.msra.mxu1 %v695_v21 }
   0xf   :  { %562 = vmatpush3.bf16.msra.mxu0 %v797_v8  ;;  %642 = vmatprep.subr.bf16.mxu1 %v703_v1 }
  0x10   :  { %563 = vmatprep.subr.bf16.mxu0 %v803_v9 }
  0x12   :  { %643 = vmatpush3.bf16.msra.mxu1 %v696_v22 }
  0x13   :  { %564 = vmatpush3.bf16.msra.mxu0 %v809_v10  ;;  %582 = vmatprep.subr.bf16.mxu1 %v674_v0 }
  0x14   :  { %565 = vmatprep.subr.bf16.mxu0 %v815_v11 }
  0x17   :  { %566 = vmatpush3.bf16.msra.mxu0 %v820_v12 }
  0x18   :  { %567 = vmatprep.subr.bf16.mxu0 %v835_v15 }
  0x1b   :  { %568 = vmatpush3.bf16.msra.mxu0 %v843_v16 }
  0x1c   :  { %569 = vmatprep.subr.bf16.mxu0 %v849_v17 }
  0x1f   :  { %570 = vmatpush3.bf16.msra.mxu0 %v855_v18 }
  0x20   :  { %648 = vmatprep.subr.bf16.mxu0 %v703_v1 }
  0x22   :  { %219 = vmatmul.mubr.bf16.vlgmr.msra.gmra.mxu0 %v690_v19 }
  0x23   :  { %649 = vmatpush3.bf16.msra.mxu0 %v828_v14  ;;  %656 = vmatprep.mubr.msk.bf16.mxu0 %vm704_vm0, %v703_v1 }
  0x24   :  { %650 = vmatprep.subr.bf16.mxu0 %v703_v1 }
  0x27   :  { %651 = vmatpush3.bf16.msra.mxu0 %v694_v20 }
  0x28   :  { %652 = vmatprep.subr.bf16.mxu0 %v703_v1 }
  0x2b   :  { %653 = vmatpush3.bf16.msra.mxu0 %v695_v21 }
  0x2c   :  { %654 = vmatprep.subr.bf16.mxu0 %v703_v1 }
  0x2f   :  { %655 = vmatpush3.bf16.msra.mxu0 %v696_v22 }
  0x30   :  { %609 = vmatprep.subr.bf16.mxu0 %v674_v0 }
  0xe2   :  { %v571_v23 = vpop.f32.mrf.mxu0 }
  0xe4   :  { %v572_v24 = vpop.f32.mrf.mxu0 }
  0xe5   :  { %v573_v25 = vadd.f32 %v572_v24, %v571_v23 }
  0xe6   :  { %v574_v27 = vpop.f32.mrf.mxu0 }
  0xe7   :  { %v221_v29 = vadd.f32 %v573_v25, %v885_v26 }
  0xe8   :  { %v575_v28 = vpop.f32.mrf.mxu0 }
  0xe9   :  { %v576_v30 = vadd.f32 %v575_v28, %v574_v27  ;;  %v227_v32 = vmax.f32 %v221_v29, 0.0 }
  0xeb   :  { %v224_v31 = vadd.f32 %v576_v30, %v885_v26 }
  0xed   :  { %v228_v33 = vmax.f32 %v224_v31, 0.0 }
  0xef   :  { %v229_v35 = vpack.c.bf16 %v228_v33, %v227_v32 }
  0xf1   :  { %645 = vmatmul.mubr.msk.bf16.vlgmr.msra.gmra.mxu1 %vm260_vm1, %v229_v35 }
  0xf2   :  { %583 = vmatpush3.bf16.msra.mxu1 %v762_v2  ;;  %352 = vmatprep.mubr.bf16.mxu1 %v699_v34 }
  0xf3   :  { %584 = vmatprep.subr.bf16.mxu1 %v767_v3 }
  0xf6   :  { %585 = vmatpush3.bf16.msra.mxu1 %v773_v4 }
  0xf7   :  { %586 = vmatprep.subr.bf16.mxu1 %v779_v5 }
  0xfa   :  { %587 = vmatpush3.bf16.msra.mxu1 %v785_v6 }
  0xfb   :  { %588 = vmatprep.subr.bf16.mxu1 %v791_v7 }
  0xfe   :  { %589 = vmatpush3.bf16.msra.mxu1 %v797_v8 }
  0xff   :  { %590 = vmatprep.subr.bf16.mxu1 %v803_v9 }
 0x102   :  { %591 = vmatpush3.bf16.msra.mxu1 %v809_v10 }
 0x103   :  { %592 = vmatprep.subr.bf16.mxu1 %v815_v11 }
 0x106   :  { %593 = vmatpush3.bf16.msra.mxu1 %v820_v12 }
 0x107   :  { %594 = vmatprep.subr.bf16.mxu1 %v835_v15 }
 0x10a   :  { %595 = vmatpush3.bf16.msra.mxu1 %v843_v16 }
 0x10b   :  { %596 = vmatprep.subr.bf16.mxu1 %v849_v17 }
 0x10e   :  { %597 = vmatpush3.bf16.msra.mxu1 %v855_v18 }
 0x10f   :  { %660 = vmatprep.subr.bf16.mxu1 %v703_v1 }
 0x111   :  { %353 = vmatmul.mubr.bf16.vlgmr.msra.gmra.mxu1 %v697_v36 }
 0x112   :  { %661 = vmatpush3.bf16.msra.mxu1 %v828_v14  ;;  %668 = vmatprep.mubr.msk.bf16.mxu1 %vm704_vm0, %v703_v1 }
 0x113   :  { %662 = vmatprep.subr.bf16.mxu1 %v703_v1 }
 0x116   :  { %663 = vmatpush3.bf16.msra.mxu1 %v694_v20 }
 0x117   :  { %664 = vmatprep.subr.bf16.mxu1 %v703_v1 }
 0x11a   :  { %665 = vmatpush3.bf16.msra.mxu1 %v695_v21 }
 0x11b   :  { %666 = vmatprep.subr.bf16.mxu1 %v703_v1 }
 0x11e   :  { %667 = vmatpush3.bf16.msra.mxu1 %v696_v22 }
 0x1b1   :  { %v298_v38 = vpop.f32.mrf.mxu1 }
 0x1b2   :  { %v299_v39 = vadd.f32 %v921_v37, %v298_v38 }
 0x1b3   :  { %v646_v40 = vpop.f32.mrf.mxu1 }
 0x1b4   :  { %306 = vst.msk [vmem:[%s987_s7] sm:$0xff] %vm305_vm2, %v299_v39 }
 0x1b5   :  { %v301_v41 = vpop.f32.mrf.mxu1 }
 0x1b6   :  { %v302_v42 = vadd.f32 %v921_v37, %v301_v41 }
 0x1b7   :  { %v647_v43 = vpop.f32.mrf.mxu1 }
 0x1b8   :  { %307 = vst.msk [vmem:[%s987_s7 + $0x8] sm:$0xff] %vm305_vm2, %v302_v42 }
 0x1d1   :  { %v598_v44 = vpop.f32.mrf.mxu1 }
 0x1d3   :  { %v599_v45 = vpop.f32.mrf.mxu1 }
 0x1d4   :  { %v600_v46 = vadd.f32 %v599_v45, %v598_v44 }
 0x1d5   :  { %v601_v47 = vpop.f32.mrf.mxu1 }
 0x1d6   :  { %v355_v49 = vadd.f32 %v600_v46, %v885_v26 }
 0x1d7   :  { %v602_v48 = vpop.f32.mrf.mxu1 }
 0x1d8   :  { %v603_v50 = vadd.f32 %v602_v48, %v601_v47  ;;  %v361_v52 = vmax.f32 %v355_v49, 0.0 }
 0x1da   :  { %v358_v51 = vadd.f32 %v603_v50, %v885_v26 }
 0x1dc   :  { %v362_v53 = vmax.f32 %v358_v51, 0.0 }
 0x1de   :  { %v363_v55 = vpack.c.bf16 %v362_v53, %v361_v52 }
 0x1e0   :  { %657 = vmatmul.mubr.msk.bf16.vlgmr.msra.gmra.mxu0 %vm260_vm1, %v363_v55 }
 0x1e1   :  { %610 = vmatpush3.bf16.msra.mxu0 %v762_v2  ;;  %454 = vmatprep.mubr.bf16.mxu0 %v702_v54 }
 0x1e2   :  { %611 = vmatprep.subr.bf16.mxu0 %v767_v3 }
 0x1e5   :  { %612 = vmatpush3.bf16.msra.mxu0 %v773_v4 }
 0x1e6   :  { %613 = vmatprep.subr.bf16.mxu0 %v779_v5 }
 0x1e9   :  { %614 = vmatpush3.bf16.msra.mxu0 %v785_v6 }
 0x1ea   :  { %615 = vmatprep.subr.bf16.mxu0 %v791_v7 }
 0x1ed   :  { %616 = vmatpush3.bf16.msra.mxu0 %v797_v8 }
 0x1ee   :  { %617 = vmatprep.subr.bf16.mxu0 %v803_v9 }
 0x1f1   :  { %618 = vmatpush3.bf16.msra.mxu0 %v809_v10 }
 0x1f2   :  { %619 = vmatprep.subr.bf16.mxu0 %v815_v11 }
 0x1f5   :  { %620 = vmatpush3.bf16.msra.mxu0 %v820_v12 }
 0x1f6   :  { %621 = vmatprep.subr.bf16.mxu0 %v835_v15 }
 0x1f9   :  { %622 = vmatpush3.bf16.msra.mxu0 %v843_v16 }
 0x1fa   :  { %623 = vmatprep.subr.bf16.mxu0 %v849_v17 }
 0x1fd   :  { %624 = vmatpush3.bf16.msra.mxu0 %v855_v18 }
 0x200   :  { %455 = vmatmul.mubr.bf16.vlgmr.msra.gmra.mxu0 %v700_v56 }
 0x2a0   :  { %v401_v57 = vpop.f32.mrf.mxu0 }
 0x2a1   :  { %v402_v58 = vadd.f32 %v921_v37, %v401_v57 }
 0x2a2   :  { %v658_v59 = vpop.f32.mrf.mxu0 }
 0x2a3   :  { %408 = vst.msk [vmem:[%s988_s8] sm:$0xff] %vm305_vm2, %v402_v58 }
 0x2a4   :  { %v404_v60 = vpop.f32.mrf.mxu0 }
 0x2a5   :  { %v405_v61 = vadd.f32 %v921_v37, %v404_v60 }
 0x2a6   :  { %v659_v62 = vpop.f32.mrf.mxu0 }
 0x2a7   :  { %409 = vst.msk [vmem:[%s988_s8 + $0x8] sm:$0xff] %vm305_vm2, %v405_v61 }
 0x2c0   :  { %v625_v63 = vpop.f32.mrf.mxu0 }
 0x2c2   :  { %v626_v0 = vpop.f32.mrf.mxu0 }
 0x2c3   :  { %v627_v1 = vadd.f32 %v626_v0, %v625_v63 }
 0x2c4   :  { %v628_v2 = vpop.f32.mrf.mxu0 }
 0x2c5   :  { %v457_v4 = vadd.f32 %v627_v1, %v885_v26 }
 0x2c6   :  { %v629_v3 = vpop.f32.mrf.mxu0 }
 0x2c7   :  { %v630_v5 = vadd.f32 %v629_v3, %v628_v2  ;;  %v463_v7 = vmax.f32 %v457_v4, 0.0 }
 0x2c9   :  { %v460_v6 = vadd.f32 %v630_v5, %v885_v26 }
 0x2cb   :  { %v464_v8 = vmax.f32 %v460_v6, 0.0 }
 0x2cd   :  { %v465_v9 = vpack.c.bf16 %v464_v8, %v463_v7 }
 0x2cf   :  { %669 = vmatmul.mubr.msk.bf16.vlgmr.msra.gmra.mxu1 %vm260_vm1, %v465_v9 }
 0x38f   :  { %v503_v10 = vpop.f32.mrf.mxu1 }
 0x390   :  { %v504_v11 = vadd.f32 %v921_v37, %v503_v10 }
 0x391   :  { %v670_v12 = vpop.f32.mrf.mxu1 }
 0x392   :  { %510 = vst.msk [vmem:[%s989_s9] sm:$0xff] %vm305_vm2, %v504_v11 }
 0x393   :  { %v506_v13 = vpop.f32.mrf.mxu1 }
 0x394   :  { %v507_v14 = vadd.f32 %v921_v37, %v506_v13 }
 0x395   :  { %v671_v15 = vpop.f32.mrf.mxu1 }
 0x396   :  { %511 = vst.msk [vmem:[%s989_s9 + $0x8] sm:$0xff] %vm305_vm2, %v507_v14 }

</bundles_post_ra>
